<compile_context>
chip_gen: v5e
topology: v5e:2x2
jax: 0.10.0
libtpu: 0.0.40
codegen_flags: <defaults>
</compile_context>

<pallas_src>
import jax
import jax.numpy as jnp
from jax.experimental import pallas as pl
from jax.experimental.pallas import tpu as pltpu

HP = 128              # lane-dense padded feature width (vreg lane count)
ONES_LANE = HP - 1    # activation lane that carries a constant 1.0 (bias path)


def _round_up(n, m):
    return ((n + m - 1) // m) * m


def _pick_tile_b(B):
    """Batch tile: big (<=2048) to hit HBM roofline, but guarantee >=2 grid steps
    for medium batches so v7x's two TensorCores both get work."""
    b8 = _round_up(max(B, 1), 8)
    tile = min(2048, b8)
    if 16 <= b8 <= 2048:
        tile = _round_up((b8 + 1) // 2, 8)
    return tile


def mlp_kernel(x_ref, w1_ref, w2_ref, w3_ref, o_ref, xp_ref):
    blk, in_size = x_ref.shape
    out_size = o_ref.shape[1]

    # Build the lane-dense padded activation in VMEM every grid step:
    #   lanes [0, in_size)   <- this tile of x
    #   lanes [in_size, 127) <- exact 0.0 (padded weight rows are zero, and stale
    #                           VMEM could hold NaN/Inf -> 0 * NaN = NaN on the MXU)
    #   lane 127 (ONES_LANE) <- 1.0, the folded-bias lane
    # Rebuilding every step (not only at program_id==0) keeps this correct when the
    # "parallel" batch axis is sharded across TensorCores; the zero-fill store uses
    # the vst slot and hides under the MXU.
    lane = jax.lax.broadcasted_iota(jnp.int32, (blk, HP), 1)
    xp_ref[...] = jnp.where(lane == ONES_LANE, 1.0, 0.0).astype(jnp.float32)
    xp_ref[:, :in_size] = x_ref[...]

    xp = xp_ref[...]
    # Biases ride the MXU accumulate via the ones lane; ReLU(1) = 1 keeps the ones
    # lane alive through the hidden layers (would break for e.g. GELU).
    h1 = jnp.maximum(
        jnp.dot(xp, w1_ref[...], preferred_element_type=jnp.float32), 0.0)
    h2 = jnp.maximum(
        jnp.dot(h1, w2_ref[...], preferred_element_type=jnp.float32), 0.0)
    h3 = jnp.dot(h2, w3_ref[...], preferred_element_type=jnp.float32)
    o_ref[...] = h3[:, :out_size].astype(o_ref.dtype)


def prepare_padded_params(params):
    """Zero-pad weights to (128, 128) and fold biases onto the ones lane.

    Correctness requirements (silently break otherwise):
      * every feature dim must fit below lane 127 (the ones lane),
      * unused rows/columns of each padded weight must be exactly zero,
      * the hidden activation is ReLU (ReLU(1) == 1 keeps the ones lane alive).
    """
    w1, b1 = params["w1"], params["b1"]
    w2, b2 = params["w2"], params["b2"]
    w3, b3 = params["w3"], params["b3"]
    in_size, hid = w1.shape
    out_size = w3.shape[1]
    assert max(in_size, hid, out_size) <= HP - 1, \
        "feature dims must fit below the ones lane (lane 127)"

    w1p = jnp.zeros((HP, HP), jnp.float32).at[:in_size, :hid].set(w1)
    w1p = w1p.at[ONES_LANE, :hid].set(b1)        # bias_1 rides the MXU accumulate
    w1p = w1p.at[ONES_LANE, ONES_LANE].set(1.0)  # propagate the ones lane (ReLU(1)=1)

    w2p = jnp.zeros((HP, HP), jnp.float32).at[:hid, :hid].set(w2)
    w2p = w2p.at[ONES_LANE, :hid].set(b2)
    w2p = w2p.at[ONES_LANE, ONES_LANE].set(1.0)

    w3p = jnp.zeros((HP, HP), jnp.float32).at[:hid, :out_size].set(w3)
    w3p = w3p.at[ONES_LANE, :out_size].set(b3)
    return w1p, w2p, w3p


def mlp_forward(x, padded_params, out_size, tile_b=None):
    """x: (B, input_size) f32 (unpadded). padded_params from prepare_padded_params."""
    w1p, w2p, w3p = padded_params
    B, in_size = x.shape
    if tile_b is None:
        tile_b = _pick_tile_b(B)
    b_pad = _round_up(B, tile_b)
    if b_pad != B:
        # Batch-row pad only (no 128-lane HBM padding of x or the output anymore).
        x = jnp.pad(x, ((0, b_pad - B), (0, 0)))

    grid = (b_pad // tile_b,)
    out = pl.pallas_call(
        mlp_kernel,
        out_shape=jax.ShapeDtypeStruct((b_pad, out_size), jnp.float32),
        grid_spec=pltpu.PrefetchScalarGridSpec(
            num_scalar_prefetch=0,
            grid=grid,
            in_specs=[
                # x streamed per batch tile; last dim == full array dim (narrow OK).
                pl.BlockSpec((tile_b, in_size), lambda i: (i, 0)),
                pl.BlockSpec((HP, HP), lambda i: (0, 0)),   # w1 (+b1): resident
                pl.BlockSpec((HP, HP), lambda i: (0, 0)),   # w2 (+b2): resident
                pl.BlockSpec((HP, HP), lambda i: (0, 0)),   # w3 (+b3): resident
            ],
            # Narrow lane-width output block: full last dim, so only out_size lanes
            # per row ever hit HBM.
            out_specs=pl.BlockSpec((tile_b, out_size), lambda i: (i, 0)),
            scratch_shapes=[pltpu.VMEM((tile_b, HP), jnp.float32)],
        ),
        compiler_params=pltpu.CompilerParams(
            dimension_semantics=("parallel",)),  # batch tiles shard across TCs (v7x)
    )(x, w1p, w2p, w3p)

    return out[:B] if b_pad != B else out


def init_params(key, input_size=6, hidden_size=32, output_size=1):
    """Deterministic init mimicking nn.Linear's U(-1/sqrt(fan_in), 1/sqrt(fan_in)).

    Weights are stored as (in, out) so the kernel computes x @ W (== PyTorch x @ W.T)."""
    ks = jax.random.split(key, 6)

    def linear(kw, kb, fan_in, fan_out):
        bound = 1.0 / jnp.sqrt(jnp.float32(fan_in))
        w = jax.random.uniform(kw, (fan_in, fan_out), jnp.float32, -bound, bound)
        b = jax.random.uniform(kb, (fan_out,), jnp.float32, -bound, bound)
        return w, b

    w1, b1 = linear(ks[0], ks[1], input_size, hidden_size)
    w2, b2 = linear(ks[2], ks[3], hidden_size, hidden_size)
    w3, b3 = linear(ks[4], ks[5], hidden_size, output_size)
    return {"w1": w1, "b1": b1, "w2": w2, "b2": b2, "w3": w3, "b3": b3}


def mlp_reference(x, p):
    h1 = jnp.maximum(x @ p["w1"] + p["b1"], 0.0)
    h2 = jnp.maximum(h1 @ p["w2"] + p["b2"], 0.0)
    return h2 @ p["w3"] + p["b3"]


if __name__ == "__main__":
    key = jax.random.PRNGKey(0)
    k_param, k_x, k_x2 = jax.random.split(key, 3)

    batch, input_size, hidden_size, output_size = 8, 6, 32, 1
    params = init_params(k_param, input_size, hidden_size, output_size)
    padded_params = prepare_padded_params(params)

    # Small smoke test (single grid step).
    x = jax.random.normal(k_x, (batch, input_size), jnp.float32)
    out = jax.block_until_ready(mlp_forward(x, padded_params, output_size))
    ref = mlp_reference(x, params)
    assert out.shape == (batch, output_size)
    assert jnp.allclose(out, ref, atol=1e-5, rtol=1e-5)

    # Exercise the multi-step grid (>=2 steps for v7x TC sharding) and the
    # batch-pad + slice path.
    x2 = jax.random.normal(k_x2, (24, input_size), jnp.float32)
    out2 = jax.block_until_ready(mlp_forward(x2, padded_params, output_size))
    ref2 = mlp_reference(x2, params)
    assert out2.shape == (24, output_size)
    assert jnp.allclose(out2, ref2, atol=1e-5, rtol=1e-5)

    print("KERNEL_OK")
</pallas_src>

<mosaic_0001>
module attributes {stable_mosaic.version = 11 : i64} {
  func.func @mlp_kernel(%arg0: i32, %arg1: memref<8x6xf32, #tpu.memory_space<vmem>>, %arg2: memref<128x128xf32, #tpu.memory_space<vmem>>, %arg3: memref<128x128xf32, #tpu.memory_space<vmem>>, %arg4: memref<128x128xf32, #tpu.memory_space<vmem>>, %arg5: memref<8x1xf32, #tpu.memory_space<vmem>>, %arg6: memref<8x128xf32, #tpu.memory_space<vmem>>) attributes {dimension_semantics = [#tpu.dimension_semantics<parallel>], iteration_bounds = array<i64: 1>, scalar_prefetch = 0 : i64, scratch_operands = 1 : i64, tpu.core_type = #tpu.core_type<tc>, window_params = [{transform_indices = @transform_0, window_bounds = array<i64: 8, 6>}, {pipeline_mode = #tpu.pipeline_mode<synchronous>, transform_indices = @transform_1, window_bounds = array<i64: 128, 128>}, {pipeline_mode = #tpu.pipeline_mode<synchronous>, transform_indices = @transform_2, window_bounds = array<i64: 128, 128>}, {pipeline_mode = #tpu.pipeline_mode<synchronous>, transform_indices = @transform_3, window_bounds = array<i64: 128, 128>}, {transform_indices = @transform_4, window_bounds = array<i64: 8, 1>}]} {
    %0 = tpu.iota {dimensions = array<i32: 1>} : vector<8x128xi32>
    %c127_i32 = arith.constant 127 : i32
    %1 = vector.broadcast %c127_i32 : i32 to vector<8x128xi32>
    %2 = arith.cmpi eq, %0, %1 : vector<8x128xi32>
    %cst = arith.constant 1.000000e+00 : f32
    %cst_0 = arith.constant 0.000000e+00 : f32
    %3 = vector.broadcast %cst : f32 to vector<8x128xf32>
    %4 = vector.broadcast %cst_0 : f32 to vector<8x128xf32>
    %5 = arith.select %2, %3, %4 : vector<8x128xi1>, vector<8x128xf32>
    %c0 = arith.constant 0 : index
    %c0_1 = arith.constant 0 : index
    %6 = vector.load %arg6[%c0, %c0_1] : memref<8x128xf32, #tpu.memory_space<vmem>>, vector<8x128xf32>
    tpu.vector_store %arg6[%c0, %c0_1], %5 {strides = array<i32>} : memref<8x128xf32, #tpu.memory_space<vmem>>, vector<8x128xf32>,
    %c0_2 = arith.constant 0 : index
    %c0_3 = arith.constant 0 : index
    %7 = vector.load %arg1[%c0_2, %c0_3] : memref<8x6xf32, #tpu.memory_space<vmem>>, vector<8x6xf32>
    %c0_4 = arith.constant 0 : index
    %c0_5 = arith.constant 0 : index
    %8 = vector.load %arg6[%c0_4, %c0_5] : memref<8x128xf32, #tpu.memory_space<vmem>>, vector<8x6xf32>
    tpu.vector_store %arg6[%c0_4, %c0_5], %7 {strides = array<i32>} : memref<8x128xf32, #tpu.memory_space<vmem>>, vector<8x6xf32>,
    %c0_6 = arith.constant 0 : index
    %c0_7 = arith.constant 0 : index
    %9 = vector.load %arg6[%c0_6, %c0_7] : memref<8x128xf32, #tpu.memory_space<vmem>>, vector<8x128xf32>
    %c0_8 = arith.constant 0 : index
    %c0_9 = arith.constant 0 : index
    %10 = vector.load %arg2[%c0_8, %c0_9] : memref<128x128xf32, #tpu.memory_space<vmem>>, vector<128x128xf32>
    %cst_10 = arith.constant dense<0.000000e+00> : vector<8x128xf32>
    %11 = tpu.matmul %9, %10, %cst_10 {dimension_numbers = #tpu.dot_dimension_numbers<[1], [0], [0], [1], [0, 0, 1, 1], [], []>} : vector<8x128xf32>, vector<128x128xf32>, vector<8x128xf32> -> vector<8x128xf32>
    %cst_11 = arith.constant 0.000000e+00 : f32
    %12 = vector.broadcast %cst_11 : f32 to vector<8x128xf32>
    %13 = arith.maximumf %11, %12 : vector<8x128xf32>
    %c0_12 = arith.constant 0 : index
    %c0_13 = arith.constant 0 : index
    %14 = vector.load %arg3[%c0_12, %c0_13] : memref<128x128xf32, #tpu.memory_space<vmem>>, vector<128x128xf32>
    %cst_14 = arith.constant dense<0.000000e+00> : vector<8x128xf32>
    %15 = tpu.matmul %13, %14, %cst_14 {dimension_numbers = #tpu.dot_dimension_numbers<[1], [0], [0], [1], [0, 0, 1, 1], [], []>} : vector<8x128xf32>, vector<128x128xf32>, vector<8x128xf32> -> vector<8x128xf32>
    %cst_15 = arith.constant 0.000000e+00 : f32
    %16 = vector.broadcast %cst_15 : f32 to vector<8x128xf32>
    %17 = arith.maximumf %15, %16 : vector<8x128xf32>
    %c0_16 = arith.constant 0 : index
    %c0_17 = arith.constant 0 : index
    %18 = vector.load %arg4[%c0_16, %c0_17] : memref<128x128xf32, #tpu.memory_space<vmem>>, vector<128x128xf32>
    %cst_18 = arith.constant dense<0.000000e+00> : vector<8x128xf32>
    %19 = tpu.matmul %17, %18, %cst_18 {dimension_numbers = #tpu.dot_dimension_numbers<[1], [0], [0], [1], [0, 0, 1, 1], [], []>} : vector<8x128xf32>, vector<128x128xf32>, vector<8x128xf32> -> vector<8x128xf32>
    %20 = vector.extract_strided_slice %19 {offsets = [0, 0], sizes = [8, 1], strides = [1, 1]} : vector<8x128xf32> to vector<8x1xf32>
    %c0_19 = arith.constant 0 : index
    %c0_20 = arith.constant 0 : index
    %21 = vector.load %arg5[%c0_19, %c0_20] : memref<8x1xf32, #tpu.memory_space<vmem>>, vector<8x1xf32>
    tpu.vector_store %arg5[%c0_19, %c0_20], %20 {strides = array<i32>} : memref<8x1xf32, #tpu.memory_space<vmem>>, vector<8x1xf32>,
    return
  }
  func.func @transform_0(%arg0: i32) -> (i32, i32) {
    %c0_i32 = arith.constant 0 : i32
    %c0_i32_0 = arith.constant 0 : i32
    return %arg0, %c0_i32 : i32, i32
  }
  func.func @transform_1(%arg0: i32) -> (i32, i32) {
    %c0_i32 = arith.constant 0 : i32
    %c0_i32_0 = arith.constant 0 : i32
    %c0_i32_1 = arith.constant 0 : i32
    return %c0_i32, %c0_i32_0 : i32, i32
  }
  func.func @transform_2(%arg0: i32) -> (i32, i32) {
    %c0_i32 = arith.constant 0 : i32
    %c0_i32_0 = arith.constant 0 : i32
    %c0_i32_1 = arith.constant 0 : i32
    return %c0_i32, %c0_i32_0 : i32, i32
  }
  func.func @transform_3(%arg0: i32) -> (i32, i32) {
    %c0_i32 = arith.constant 0 : i32
    %c0_i32_0 = arith.constant 0 : i32
    %c0_i32_1 = arith.constant 0 : i32
    return %c0_i32, %c0_i32_0 : i32, i32
  }
  func.func @transform_4(%arg0: i32) -> (i32, i32) {
    %c0_i32 = arith.constant 0 : i32
    %c0_i32_0 = arith.constant 0 : i32
    return %arg0, %c0_i32 : i32, i32
  }
}

</mosaic_0001>

<bundles_post_ra>
// kernel: tpu_custom_call.1
= control target key start
LH: loop header
LB: loop body
LE: loop exit
PB: predicated region body
PF: predicated region fallthrough
CT: control target
= control target key end

     0   :  { %9 = vsyncpa [#allocation4], 0  ;;  %s362_s0 = inlined_call_operand.hbm [shape: f32[8,6], index: 0, kind: input, shape index: {}]   ;;  %s363_s1 = inlined_call_operand.hbm [shape: f32[128,128], index: 1, kind: input, shape index: {}]   ;;  %s364_s2 = inlined_call_operand.hbm [shape: f32[128,128], index: 2, kind: input, shape index: {}]   ;;  %s365_s3 = inlined_call_operand.hbm [shape: f32[128,128], index: 3, kind: input, shape index: {}]   ;;  %s366_s4 = inlined_call_operand.vmem [shape: f32[8,1], index: 4, kind: output, shape index: {}]  }
   0x1   :  { %10 = vsyncpa [#allocation6], 0  ;;  %s27_s17 = sshll.u32 %s363_s1, 4  ;;  %s28_s17 = int_to_ptr.hbm [resolvable:$true] %s27_s17 }
   0x2   :  { %11 = vsyncpa [#allocation9], 0  ;;  %s315_s18 = smov [#allocation5]   ;;  %s17_s22 = sshll.u32 %s362_s0, 4  ;;  %s18_s22 = int_to_ptr.hbm [resolvable:$true] %s17_s22 }
   0x3   :  { %s29_s19 = sshll.u32 %s315_s18, 4  ;;  %s316_s23 = smov 128   ;;  %s30_s19 = int_to_ptr.vmem [resolvable:$true] %s29_s19 }
   0x4   :  { %s317_s24 = smov 8   ;;  %s318_s25 = smov [#allocation3]  }
   0x5   :  { %35 = dma.hbm_to_vmem [thread:$0]  %s28_s17, 2048, %s30_s19, [#allocation6], %s316_s23, %s316_s23, %s317_s24  }
   0x6   :  { %s19_s26 = sshll.u32 %s318_s25, 4  ;;  %s40_s29 = sshll.u32 %s364_s2, 4  ;;  %s20_s26 = int_to_ptr.vmem [resolvable:$true] %s19_s26  ;;  %s41_s29 = int_to_ptr.hbm [resolvable:$true] %s40_s29 }
   0x7   :  { %22 = dma.hbm_to_vmem [thread:$0]  %s18_s22, 128, %s20_s26, [#allocation4]  }
   0x8   :  { %s53_s5 = sshll.u32 %s365_s3, 4  ;;  %s319_s6 = smov [#allocation7]   ;;  %s54_s5 = int_to_ptr.hbm [resolvable:$true] %s53_s5 }
   0x9   :  { %s42_s7 = sshll.u32 %s319_s6, 4  ;;  %s320_s0 = smov [#allocation8]   ;;  %s43_s7 = int_to_ptr.vmem [resolvable:$true] %s42_s7 }
   0xa   :  { %48 = dma.hbm_to_vmem [thread:$0]  %s41_s29, 2048, %s43_s7, [#allocation6], %s316_s23, %s316_s23, %s317_s24  }
   0xb   :  { %s55_s8 = sshll.u32 %s320_s0, 4  ;;  %s56_s8 = int_to_ptr.vmem [resolvable:$true] %s55_s8 }
   0xc   :  { %61 = dma.hbm_to_vmem [thread:$0]  %s54_s5, 2048, %s56_s8, [#allocation9], %s316_s23, %s316_s23, %s317_s24  }
   0xd   :  { %309 = dma.done.wait [#allocation4], 128  }
   0xe   :  { %310 = vsyncadd [#allocation4], 4294967168 }
   0xf   :  { %311 = dma.done.wait [#allocation6], 4096  }
  0x10   :  { %312 = vsyncadd [#allocation6], 4294963200 }
  0x11   :  { %313 = dma.done.wait [#allocation9], 2048  }
  0x12   :  { %314 = vsyncadd [#allocation9], 4294965248  ;;  %v78_v0 = vlaneseq  ;;  %v321_v2 = vmov 0.0   ;;  %v102_v4 = vld [vmem:[#allocation5 + $0x78] sm:$0xff]  ;;  %v101_v5 = vld [vmem:[#allocation5 + $0x70] sm:$0xff]  ;;  %vm84_vm1 = vcmask 48128  }
  0x13   :  { %103 = vmatpush.msra.mxu0 %v102_v4  ;;  %v100_v6 = vld [vmem:[#allocation5 + $0x68] sm:$0xff]  ;;  %v99_v7 = vld [vmem:[#allocation5 + $0x60] sm:$0xff]  ;;  %v83_v8 = vld [vmem:[#allocation3] sm:$0xff]  ;;  %vm197_vm2 = vcmask 7168  }
  0x14   :  { %v79_v1 = vand.u32 127, %v78_v0  ;;  %v139_v9 = vld [vmem:[#allocation7 + $0x78] sm:$0xff]  ;;  %v138_v11 = vld [vmem:[#allocation7 + $0x70] sm:$0xff]  ;;  %v137_v12 = vld [vmem:[#allocation7 + $0x68] sm:$0xff] }
  0x15   :  { %104 = vmatpush.msra.mxu0 %v101_v5  ;;  %v98_v10 = vld [vmem:[#allocation5 + $0x58] sm:$0xff]  ;;  %140 = vmatpush.msra.mxu1 %v139_v9  ;;  %v97_v13 = vld [vmem:[#allocation5 + $0x50] sm:$0xff]  ;;  %v136_v14 = vld [vmem:[#allocation7 + $0x60] sm:$0xff] }
  0x16   :  { %vm80_vm0 = vcmp.eq.s32.totalorder %v79_v1, 127  ;;  %v96_v15 = vld [vmem:[#allocation5 + $0x48] sm:$0xff]  ;;  %v135_v16 = vld [vmem:[#allocation7 + $0x58] sm:$0xff]  ;;  %v95_v17 = vld [vmem:[#allocation5 + $0x40] sm:$0xff] }
  0x17   :  { %v81_v3 = vsel %vm80_vm0, 1.0, %v321_v2  ;;  %105 = vmatpush.msra.mxu0 %v100_v6  ;;  %141 = vmatpush.msra.mxu1 %v138_v11  ;;  %v134_v18 = vld [vmem:[#allocation7 + $0x50] sm:$0xff]  ;;  %v94_v19 = vld [vmem:[#allocation5 + $0x38] sm:$0xff]  ;;  %v133_v20 = vld [vmem:[#allocation7 + $0x48] sm:$0xff] }
  0x18   :  { %82 = vst [vmem:[#allocation2] sm:$0xff] %v81_v3  ;;  %v93_v21 = vld [vmem:[#allocation5 + $0x30] sm:$0xff]  ;;  %v132_v22 = vld [vmem:[#allocation7 + $0x40] sm:$0xff]  ;;  %v92_v23 = vld [vmem:[#allocation5 + $0x28] sm:$0xff] }
  0x19   :  { %85 = vst.msk [vmem:[#allocation2] sm:$0xff] %vm84_vm1, %v83_v8  ;;  %106 = vmatpush.msra.mxu0 %v99_v7  ;;  %142 = vmatpush.msra.mxu1 %v137_v12  ;;  %v131_v24 = vld [vmem:[#allocation7 + $0x38] sm:$0xff]  ;;  %v91_v25 = vld [vmem:[#allocation5 + $0x20] sm:$0xff]  ;;  %v130_v26 = vld [vmem:[#allocation7 + $0x30] sm:$0xff] }
  0x1a   :  { %v90_v27 = vld [vmem:[#allocation5 + $0x18] sm:$0xff]  ;;  %v129_v28 = vld [vmem:[#allocation7 + $0x28] sm:$0xff]  ;;  %v89_v29 = vld [vmem:[#allocation5 + $0x10] sm:$0xff] }
  0x1b   :  { %107 = vmatpush.msra.mxu0 %v98_v10  ;;  %143 = vmatpush.msra.mxu1 %v136_v14  ;;  %v128_v30 = vld [vmem:[#allocation7 + $0x20] sm:$0xff]  ;;  %v88_v31 = vld [vmem:[#allocation5 + $0x8] sm:$0xff]  ;;  %v127_v32 = vld [vmem:[#allocation7 + $0x18] sm:$0xff] }
  0x1c   :  { %v87_v33 = vld [vmem:[#allocation5] sm:$0xff]  ;;  %v126_v35 = vld [vmem:[#allocation7 + $0x10] sm:$0xff]  ;;  %v125_v36 = vld [vmem:[#allocation7 + $0x8] sm:$0xff] }
  0x1d   :  { %108 = vmatpush.msra.mxu0 %v97_v13  ;;  %144 = vmatpush.msra.mxu1 %v135_v16  ;;  %v124_v37 = vld [vmem:[#allocation7] sm:$0xff]  ;;  %v176_v38 = vld [vmem:[#allocation8 + $0x78] sm:$0xff]  ;;  %v175_v39 = vld [vmem:[#allocation8 + $0x70] sm:$0xff] }
  0x1e   :  { %177 = vmatpush.msra.mxu2 %v176_v38  ;;  %v174_v40 = vld [vmem:[#allocation8 + $0x68] sm:$0xff]  ;;  %v173_v41 = vld [vmem:[#allocation8 + $0x60] sm:$0xff]  ;;  %v172_v42 = vld [vmem:[#allocation8 + $0x58] sm:$0xff] }
  0x1f   :  { %109 = vmatpush.msra.mxu0 %v96_v15  ;;  %145 = vmatpush.msra.mxu1 %v134_v18  ;;  %v171_v43 = vld [vmem:[#allocation8 + $0x50] sm:$0xff]  ;;  %v170_v44 = vld [vmem:[#allocation8 + $0x48] sm:$0xff]  ;;  %v169_v45 = vld [vmem:[#allocation8 + $0x40] sm:$0xff] }
  0x20   :  { %v86_v34 = vld [vmem:[#allocation2] sm:$0xff]  ;;  %178 = vmatpush.msra.mxu2 %v175_v39  ;;  %v168_v46 = vld [vmem:[#allocation8 + $0x38] sm:$0xff]  ;;  %v166_v48 = vld [vmem:[#allocation8 + $0x28] sm:$0xff] }
  0x21   :  { %110 = vmatpush.msra.mxu0 %v95_v17  ;;  %146 = vmatpush.msra.mxu1 %v133_v20  ;;  %v167_v47 = vld [vmem:[#allocation8 + $0x30] sm:$0xff]  ;;  %v165_v49 = vld [vmem:[#allocation8 + $0x20] sm:$0xff]  ;;  %v164_v50 = vld [vmem:[#allocation8 + $0x18] sm:$0xff] }
  0x22   :  { %179 = vmatpush.msra.mxu2 %v174_v40  ;;  %v163_v51 = vld [vmem:[#allocation8 + $0x10] sm:$0xff]  ;;  %v162_v54 = vld [vmem:[#allocation8 + $0x8] sm:$0xff]  ;;  %v161_v55 = vld [vmem:[#allocation8] sm:$0xff] }
  0x23   :  { %111 = vmatpush.msra.mxu0 %v94_v19  ;;  %147 = vmatpush.msra.mxu1 %v132_v22 }
  0x24   :  { %180 = vmatpush.msra.mxu2 %v173_v41 }
  0x25   :  { %112 = vmatpush.msra.mxu0 %v93_v21  ;;  %148 = vmatpush.msra.mxu1 %v131_v24 }
  0x26   :  { %181 = vmatpush.msra.mxu2 %v172_v42 }
  0x27   :  { %113 = vmatpush.msra.mxu0 %v92_v23  ;;  %149 = vmatpush.msra.mxu1 %v130_v26 }
  0x28   :  { %182 = vmatpush.msra.mxu2 %v171_v43 }
  0x29   :  { %114 = vmatpush.msra.mxu0 %v91_v25  ;;  %150 = vmatpush.msra.mxu1 %v129_v28 }
  0x2a   :  { %183 = vmatpush.msra.mxu2 %v170_v44 }
  0x2b   :  { %115 = vmatpush.msra.mxu0 %v90_v27  ;;  %151 = vmatpush.msra.mxu1 %v128_v30 }
  0x2c   :  { %184 = vmatpush.msra.mxu2 %v169_v45 }
  0x2d   :  { %116 = vmatpush.msra.mxu0 %v89_v29  ;;  %152 = vmatpush.msra.mxu1 %v127_v32 }
  0x2e   :  { %185 = vmatpush.msra.mxu2 %v168_v46 }
  0x2f   :  { %117 = vmatpush.msra.mxu0 %v88_v31  ;;  %153 = vmatpush.msra.mxu1 %v126_v35 }
  0x30   :  { %186 = vmatpush.msra.mxu2 %v167_v47 }
  0x31   :  { %118 = vmatpush.msra.mxu0 %v87_v33  ;;  %154 = vmatpush.msra.mxu1 %v125_v36 }
  0x32   :  { %119 = vmatmul.f32.vlgmr.msra.gmra.mxu0 %v86_v34  ;;  %187 = vmatpush.msra.mxu2 %v166_v48 }
  0x33   :  { %155 = vmatpush.msra.mxu1 %v124_v37 }
  0x34   :  { %188 = vmatpush.msra.mxu2 %v165_v49 }
  0x36   :  { %189 = vmatpush.msra.mxu2 %v164_v50 }
  0x38   :  { %190 = vmatpush.msra.mxu2 %v163_v51 }
  0x3a   :  { %191 = vmatpush.msra.mxu2 %v162_v54 }
  0x3c   :  { %192 = vmatpush.msra.mxu2 %v161_v55 }
  0xaf   :  { %v120_v52 = vpop.f32.mrf.mxu0 }
  0xb0   :  { %v123_v53 = vmax.f32 %v120_v52, 0.0 }
  0xb2   :  { %156 = vmatmul.f32.vlgmr.msra.gmra.mxu1 %v123_v53 }
 0x12f   :  { %v157_v56 = vpop.f32.mrf.mxu1 }
 0x130   :  { %v160_v57 = vmax.f32 %v157_v56, 0.0 }
 0x132   :  { %193 = vmatmul.f32.vlgmr.msra.gmra.mxu2 %v160_v57 }
 0x1b5   :  { %v194_v58 = vpop.f32.mrf.mxu2 }
 0x1b6   :  { %198 = vst.msk [vmem:[%s366_s4] sm:$0xff] %vm197_vm2, %v194_v58 }
 0x1b7   :  { %203 = vsyncpa [#allocation4], 1 }
 0x1b8   :  { %204 = vsyncpa [#allocation6], 1 }
 0x1b9   :  { %205 = vsyncpa [#allocation9], 1 }

</bundles_post_ra>
